<compile_context>
chip_gen: v5e
topology: v5e:2x2
jax: 0.10.0
libtpu: 0.0.40
codegen_flags: <defaults>
</compile_context>

<pallas_src>
import jax
import jax.numpy as jnp
from jax import lax
from jax.experimental import pallas as pl
from jax.experimental.pallas import tpu as pltpu


def _round_up(n, m):
    return -(-n // m) * m


def _ngram_mlp_kernel(x_ref, w1f_ref, b1_ref, w2_ref, b2_ref, out_ref):
    B, k = x_ref.shape
    kV, Hp = w1f_ref.shape
    Vp = kV // k

    xx = x_ref[...]                                            # (B, k) int32
    # (1, Vp) iota; the == broadcast keeps the live int32 temporary tiny.
    lane_iota = lax.broadcasted_iota(jnp.int32, (1, Vp), 1)

    # Concatenated one-hot of the k-token context: column j*Vp + v is 1 iff
    # x[:, j] == v.  Each chunk is a lane-aligned (B, Vp) bf16 block, so the
    # concat is pure vreg placement (no sublane<->lane relayout).
    dt = w1f_ref.dtype
    one_hot = jnp.concatenate(
        [(xx[:, j:j + 1] == lane_iota).astype(dt) for j in range(k)], axis=-1)

    # Fused embed + layer-1: a single MXU dot with K = k*Vp.
    h = jnp.dot(one_hot, w1f_ref[...], preferred_element_type=jnp.float32)
    h = jnp.maximum(h + b1_ref[...], 0.0)                      # bias + ReLU (VPU)

    o = jnp.dot(h.astype(w2_ref.dtype), w2_ref[...],
                preferred_element_type=jnp.float32)
    out_ref[...] = (o + b2_ref[...]).astype(out_ref.dtype)


def ngram_char_lm_forward(x, emb, w1, b1, w2, b2, *, batch_tile=1024):
    """x: (B, k) int tokens; emb: (V, E); w1: (k*E, H); b1: (H,); w2: (H, V);
    b2: (V,).  Returns float32 logits (B, V) == fc2(relu(fc1(emb(x).flatten())))."""
    B, k = x.shape
    V, E = emb.shape
    F, H = w1.shape
    assert F == k * E and w2.shape == (H, V) and b1.shape == (H,) and b2.shape == (V,)

    Vp = _round_up(V, 128)      # lane-pad vocab (one-hot columns / logits)
    Hp = _round_up(H, 128)      # lane-pad hidden

    # Fold the embedding into layer 1 (weight-only; in a real model cache this
    # alongside the params instead of recomputing per call).
    #   W1f[j*Vp + v, :] = emb[v] @ W1[j*E:(j+1)*E, :]
    # TODO(synk): for vocabularies >> 1K the (k*V, H) table gets large — keep
    # emb separate there and tile V of W2/out instead.
    w1f = jnp.einsum('ve,keh->kvh',
                     emb.astype(jnp.float32),
                     w1.astype(jnp.float32).reshape(k, E, H))
    w1f = jnp.pad(w1f, ((0, 0), (0, Vp - V), (0, Hp - H)))
    w1f = w1f.reshape(k * Vp, Hp).astype(jnp.bfloat16)

    w2p = jnp.pad(w2.astype(jnp.bfloat16), ((0, Hp - H), (0, Vp - V)))
    b1r = jnp.pad(b1.astype(jnp.float32), (0, Hp - H)).reshape(1, Hp)
    b2r = jnp.pad(b2.astype(jnp.float32), (0, Vp - V)).reshape(1, Vp)
    # NOTE: out-of-range ids (x < 0 or x >= V) yield an all-zero embedding via
    # the one-hot (nn.Embedding would be an error); clamp here if untrusted.
    x = x.astype(jnp.int32)

    if B <= 128:
        # Tiny batch: gridless single-shot call, everything VMEM-resident.
        Bp = max(16, _round_up(B, 16))           # bf16 sublane tile is 16
        xp = jnp.pad(x, ((0, Bp - B), (0, 0))) if Bp != B else x
        vmem = pl.BlockSpec(memory_space=pltpu.MemorySpace.VMEM)
        out = pl.pallas_call(
            _ngram_mlp_kernel,
            out_shape=jax.ShapeDtypeStruct((Bp, Vp), jnp.float32),
            in_specs=[vmem] * 5,
            out_specs=vmem,
            compiler_params=pltpu.CompilerParams(
                vmem_limit_bytes=32 * 1024 * 1024),
        )(xp, w1f, b1r, w2p, b2r)
    else:
        # Batch-tiled grid: >= 2 steps so the "parallel" axis can be split
        # across both v7x TensorCores; tiles up to `batch_tile` amortize the
        # per-step grid overhead.
        TM = min(batch_tile, _round_up(pl.cdiv(B, 2), 16))
        Bp = _round_up(B, TM)
        xp = jnp.pad(x, ((0, Bp - B), (0, 0))) if Bp != B else x
        # TODO(synk): on v7x with large H*V, single-buffer the constant-index
        # weight specs (pipeline_mode=pl.Buffered(1)) and tile Vp of W2/out.
        out = pl.pallas_call(
            _ngram_mlp_kernel,
            out_shape=jax.ShapeDtypeStruct((Bp, Vp), jnp.float32),
            grid=(Bp // TM,),
            in_specs=[
                pl.BlockSpec((TM, k), lambda i: (i, 0)),
                pl.BlockSpec((k * Vp, Hp), lambda i: (0, 0)),
                pl.BlockSpec((1, Hp), lambda i: (0, 0)),
                pl.BlockSpec((Hp, Vp), lambda i: (0, 0)),
                pl.BlockSpec((1, Vp), lambda i: (0, 0)),
            ],
            out_specs=pl.BlockSpec((TM, Vp), lambda i: (i, 0)),
            compiler_params=pltpu.CompilerParams(
                dimension_semantics=("parallel",),
                vmem_limit_bytes=32 * 1024 * 1024),
        )(xp, w1f, b1r, w2p, b2r)

    return out[:B, :V]


def reference_forward(x, emb, w1, b1, w2, b2):
    """Pure-JAX float32 reference with the original module semantics."""
    B = x.shape[0]
    flat = jnp.take(emb.astype(jnp.float32), x, axis=0).reshape(B, -1)
    h = jnp.maximum(flat @ w1.astype(jnp.float32) + b1.astype(jnp.float32), 0.0)
    return h @ w2.astype(jnp.float32) + b2.astype(jnp.float32)


if __name__ == "__main__":
    # Small, TPU-friendly shapes consistent with NgramCharLM.__init__:
    vocab_size, embed_dim, hidden_dim, k = 128, 16, 128, 8

    key = jax.random.PRNGKey(0)
    kx_small, kx_big, ke, kw1, kb1, kw2, kb2 = jax.random.split(key, 7)

    emb = jax.random.normal(ke, (vocab_size, embed_dim), jnp.float32) * 0.1
    w1 = jax.random.normal(kw1, (embed_dim * k, hidden_dim), jnp.float32) * 0.05
    b1 = jax.random.normal(kb1, (hidden_dim,), jnp.float32) * 0.01
    w2 = jax.random.normal(kw2, (hidden_dim, vocab_size), jnp.float32) * 0.05
    b2 = jax.random.normal(kb2, (vocab_size,), jnp.float32) * 0.01

    fwd = jax.jit(ngram_char_lm_forward)

    # Exercise both paths: gridless (B=8) and batch-tiled grid (B=320 -> 2 steps).
    for name, xkey, batch in (("gridless", kx_small, 8), ("gridded", kx_big, 320)):
        x = jax.random.randint(xkey, (batch, k), 0, vocab_size, dtype=jnp.int32)
        out = jax.block_until_ready(fwd(x, emb, w1, b1, w2, b2))
        ref = reference_forward(x, emb, w1, b1, w2, b2)
        assert out.shape == (batch, vocab_size), (name, out.shape)
        assert out.dtype == jnp.float32, (name, out.dtype)
        max_err = float(jnp.max(jnp.abs(out - ref)))
        assert max_err < 1e-2, (name, max_err)

    print("KERNEL_OK")
</pallas_src>

<mosaic_0001>
module attributes {stable_mosaic.version = 11 : i64} {
  func.func @_ngram_mlp_kernel(%arg0: memref<16x8xi32, #tpu.memory_space<vmem>>, %arg1: memref<1024x128xbf16, #tpu.memory_space<vmem>>, %arg2: memref<1x128xf32, #tpu.memory_space<vmem>>, %arg3: memref<128x128xbf16, #tpu.memory_space<vmem>>, %arg4: memref<1x128xf32, #tpu.memory_space<vmem>>, %arg5: memref<16x128xf32, #tpu.memory_space<vmem>>) attributes {dimension_semantics = [], scalar_prefetch = 0 : i64, scratch_operands = 0 : i64, tpu.core_type = #tpu.core_type<tc>} {
    %c0 = arith.constant 0 : index
    %c0_0 = arith.constant 0 : index
    %0 = vector.load %arg0[%c0, %c0_0] : memref<16x8xi32, #tpu.memory_space<vmem>>, vector<16x8xi32>
    %1 = tpu.iota {dimensions = array<i32: 1>} : vector<1x128xi32>
    %2 = vector.extract_strided_slice %0 {offsets = [0, 0], sizes = [16, 1], strides = [1, 1]} : vector<16x8xi32> to vector<16x1xi32>
    %3 = vector.broadcast %2 : vector<16x1xi32> to vector<16x128xi32>
    %4 = vector.broadcast %1 : vector<1x128xi32> to vector<16x128xi32>
    %5 = arith.cmpi eq, %3, %4 : vector<16x128xi32>
    %6 = arith.extui %5 : vector<16x128xi1> to vector<16x128xi32>
    %7 = arith.sitofp %6 : vector<16x128xi32> to vector<16x128xf32>
    %8 = arith.truncf %7 : vector<16x128xf32> to vector<16x128xbf16>
    %9 = vector.extract_strided_slice %0 {offsets = [0, 1], sizes = [16, 1], strides = [1, 1]} : vector<16x8xi32> to vector<16x1xi32>
    %10 = vector.broadcast %9 : vector<16x1xi32> to vector<16x128xi32>
    %11 = vector.broadcast %1 : vector<1x128xi32> to vector<16x128xi32>
    %12 = arith.cmpi eq, %10, %11 : vector<16x128xi32>
    %13 = arith.extui %12 : vector<16x128xi1> to vector<16x128xi32>
    %14 = arith.sitofp %13 : vector<16x128xi32> to vector<16x128xf32>
    %15 = arith.truncf %14 : vector<16x128xf32> to vector<16x128xbf16>
    %16 = vector.extract_strided_slice %0 {offsets = [0, 2], sizes = [16, 1], strides = [1, 1]} : vector<16x8xi32> to vector<16x1xi32>
    %17 = vector.broadcast %16 : vector<16x1xi32> to vector<16x128xi32>
    %18 = vector.broadcast %1 : vector<1x128xi32> to vector<16x128xi32>
    %19 = arith.cmpi eq, %17, %18 : vector<16x128xi32>
    %20 = arith.extui %19 : vector<16x128xi1> to vector<16x128xi32>
    %21 = arith.sitofp %20 : vector<16x128xi32> to vector<16x128xf32>
    %22 = arith.truncf %21 : vector<16x128xf32> to vector<16x128xbf16>
    %23 = vector.extract_strided_slice %0 {offsets = [0, 3], sizes = [16, 1], strides = [1, 1]} : vector<16x8xi32> to vector<16x1xi32>
    %24 = vector.broadcast %23 : vector<16x1xi32> to vector<16x128xi32>
    %25 = vector.broadcast %1 : vector<1x128xi32> to vector<16x128xi32>
    %26 = arith.cmpi eq, %24, %25 : vector<16x128xi32>
    %27 = arith.extui %26 : vector<16x128xi1> to vector<16x128xi32>
    %28 = arith.sitofp %27 : vector<16x128xi32> to vector<16x128xf32>
    %29 = arith.truncf %28 : vector<16x128xf32> to vector<16x128xbf16>
    %30 = vector.extract_strided_slice %0 {offsets = [0, 4], sizes = [16, 1], strides = [1, 1]} : vector<16x8xi32> to vector<16x1xi32>
    %31 = vector.broadcast %30 : vector<16x1xi32> to vector<16x128xi32>
    %32 = vector.broadcast %1 : vector<1x128xi32> to vector<16x128xi32>
    %33 = arith.cmpi eq, %31, %32 : vector<16x128xi32>
    %34 = arith.extui %33 : vector<16x128xi1> to vector<16x128xi32>
    %35 = arith.sitofp %34 : vector<16x128xi32> to vector<16x128xf32>
    %36 = arith.truncf %35 : vector<16x128xf32> to vector<16x128xbf16>
    %37 = vector.extract_strided_slice %0 {offsets = [0, 5], sizes = [16, 1], strides = [1, 1]} : vector<16x8xi32> to vector<16x1xi32>
    %38 = vector.broadcast %37 : vector<16x1xi32> to vector<16x128xi32>
    %39 = vector.broadcast %1 : vector<1x128xi32> to vector<16x128xi32>
    %40 = arith.cmpi eq, %38, %39 : vector<16x128xi32>
    %41 = arith.extui %40 : vector<16x128xi1> to vector<16x128xi32>
    %42 = arith.sitofp %41 : vector<16x128xi32> to vector<16x128xf32>
    %43 = arith.truncf %42 : vector<16x128xf32> to vector<16x128xbf16>
    %44 = vector.extract_strided_slice %0 {offsets = [0, 6], sizes = [16, 1], strides = [1, 1]} : vector<16x8xi32> to vector<16x1xi32>
    %45 = vector.broadcast %44 : vector<16x1xi32> to vector<16x128xi32>
    %46 = vector.broadcast %1 : vector<1x128xi32> to vector<16x128xi32>
    %47 = arith.cmpi eq, %45, %46 : vector<16x128xi32>
    %48 = arith.extui %47 : vector<16x128xi1> to vector<16x128xi32>
    %49 = arith.sitofp %48 : vector<16x128xi32> to vector<16x128xf32>
    %50 = arith.truncf %49 : vector<16x128xf32> to vector<16x128xbf16>
    %51 = vector.extract_strided_slice %0 {offsets = [0, 7], sizes = [16, 1], strides = [1, 1]} : vector<16x8xi32> to vector<16x1xi32>
    %52 = vector.broadcast %51 : vector<16x1xi32> to vector<16x128xi32>
    %53 = vector.broadcast %1 : vector<1x128xi32> to vector<16x128xi32>
    %54 = arith.cmpi eq, %52, %53 : vector<16x128xi32>
    %55 = arith.extui %54 : vector<16x128xi1> to vector<16x128xi32>
    %56 = arith.sitofp %55 : vector<16x128xi32> to vector<16x128xf32>
    %57 = arith.truncf %56 : vector<16x128xf32> to vector<16x128xbf16>
    %58 = tpu.concatenate %8, %15, %22, %29, %36, %43, %50, %57 in 1 : vector<16x128xbf16>, vector<16x128xbf16>, vector<16x128xbf16>, vector<16x128xbf16>, vector<16x128xbf16>, vector<16x128xbf16>, vector<16x128xbf16>, vector<16x128xbf16> -> vector<16x1024xbf16>
    %c0_1 = arith.constant 0 : index
    %c0_2 = arith.constant 0 : index
    %59 = vector.load %arg1[%c0_1, %c0_2] : memref<1024x128xbf16, #tpu.memory_space<vmem>>, vector<1024x128xbf16>
    %cst = arith.constant dense<0.000000e+00> : vector<16x128xf32>
    %60 = tpu.matmul %58, %59, %cst {dimension_numbers = #tpu.dot_dimension_numbers<[1], [0], [0], [1], [0, 0, 1, 1], [], []>} : vector<16x1024xbf16>, vector<1024x128xbf16>, vector<16x128xf32> -> vector<16x128xf32>
    %c0_3 = arith.constant 0 : index
    %c0_4 = arith.constant 0 : index
    %61 = vector.load %arg2[%c0_3, %c0_4] : memref<1x128xf32, #tpu.memory_space<vmem>>, vector<1x128xf32>
    %62 = vector.broadcast %61 : vector<1x128xf32> to vector<16x128xf32>
    %63 = arith.addf %60, %62 : vector<16x128xf32>
    %cst_5 = arith.constant 0.000000e+00 : f32
    %64 = vector.broadcast %cst_5 : f32 to vector<16x128xf32>
    %65 = arith.maximumf %63, %64 : vector<16x128xf32>
    %66 = arith.truncf %65 : vector<16x128xf32> to vector<16x128xbf16>
    %c0_6 = arith.constant 0 : index
    %c0_7 = arith.constant 0 : index
    %67 = vector.load %arg3[%c0_6, %c0_7] : memref<128x128xbf16, #tpu.memory_space<vmem>>, vector<128x128xbf16>
    %cst_8 = arith.constant dense<0.000000e+00> : vector<16x128xf32>
    %68 = tpu.matmul %66, %67, %cst_8 {dimension_numbers = #tpu.dot_dimension_numbers<[1], [0], [0], [1], [0, 0, 1, 1], [], []>} : vector<16x128xbf16>, vector<128x128xbf16>, vector<16x128xf32> -> vector<16x128xf32>
    %c0_9 = arith.constant 0 : index
    %c0_10 = arith.constant 0 : index
    %69 = vector.load %arg4[%c0_9, %c0_10] : memref<1x128xf32, #tpu.memory_space<vmem>>, vector<1x128xf32>
    %70 = vector.broadcast %69 : vector<1x128xf32> to vector<16x128xf32>
    %71 = arith.addf %68, %70 : vector<16x128xf32>
    %c0_11 = arith.constant 0 : index
    %c0_12 = arith.constant 0 : index
    %72 = vector.load %arg5[%c0_11, %c0_12] : memref<16x128xf32, #tpu.memory_space<vmem>>, vector<16x128xf32>
    tpu.vector_store %arg5[%c0_11, %c0_12], %71 {strides = array<i32>} : memref<16x128xf32, #tpu.memory_space<vmem>>, vector<16x128xf32>,
    return
  }
}

</mosaic_0001>

<bundles_post_ra>
// kernel: ngram_char_lm_forward.1
= control target key start
LH: loop header
LB: loop body
LE: loop exit
PB: predicated region body
PF: predicated region fallthrough
CT: control target
= control target key end

     0   :  { %v1304_v0 = vmov 2   ;;  %v1305_v1 = vmov 0   ;;  %v1306_v3 = vmov 3   ;;  %v1307_v7 = vmov 1   ;;  %s1611_s0 = inlined_call_operand.vmem [shape: s32[16,8], index: 0, kind: input, shape index: {}]   ;;  %s1612_s1 = inlined_call_operand.vmem [shape: bf16[1024,128], index: 1, kind: input, shape index: {}]   ;;  %s1613_s2 = inlined_call_operand.vmem [shape: f32[1,128], index: 2, kind: input, shape index: {}]   ;;  %s1614_s4 = inlined_call_operand.vmem [shape: f32[1,128], index: 4, kind: input, shape index: {}]   ;;  %s1615_s3 = inlined_call_operand.vmem [shape: bf16[128,128], index: 3, kind: input, shape index: {}]   ;;  %s1616_s5 = inlined_call_operand.vmem [shape: f32[16,128], index: 5, kind: output, shape index: {}]  }
   0x1   :  { %1288 = vset.pattern.permute.xlu0 %v1304_v0  ;;  %1289 = vset.pattern.permute.xlu1 %v1305_v1  ;;  %v20_v2 = vld [vmem:[%s1611_s0] sm:$0xff]  ;;  %v21_v4 = vld [vmem:[%s1611_s0 + $0x8] sm:$0xff]  ;;  %v1238_v5 = vld [vmem:[%s1612_s1 + $0xf8] sm:$0xff]  ;;  %v1308_v9 = vmov 6   ;;  %v1309_v15 = vmov 4   ;;  %v1310_v18 = vmov 7   ;;  %v22_v39 = vlaneseq }
   0x2   :  { %25 = vperm.xlu1 %1289, %v20_v2   ;;  %53 = vperm.xlu0 %1288, %v20_v2   ;;  %v1214_v6 = vld [vmem:[%s1612_s1 + $0x38] sm:$0xff]  ;;  %v1237_v10 = vld [vmem:[%s1612_s1 + $0xf0] sm:$0xff]  ;;  %v1236_v13 = vld [vmem:[%s1612_s1 + $0xe8] sm:$0xff]  ;;  %v1311_v19 = vmov 5   ;;  %v1312_v53 = vmov 0.0  }
   0x3   :  { %1290 = vset.pattern.permute.xlu2 %v1306_v3  ;;  %v1230_v8 = vld [vmem:[%s1612_s1 + $0xb8] sm:$0xff]  ;;  %742 = vmatpush.bf16.msra.mxu3 %v1238_v5  ;;  %v1213_v11 = vld [vmem:[%s1612_s1 + $0x30] sm:$0xff]  ;;  %v1212_v14 = vld [vmem:[%s1612_s1 + $0x28] sm:$0xff]  ;;  %v1445_v43 = vand.u32 127, %v22_v39 }
   0x4   :  { %67 = vperm.xlu2 %1290, %v20_v2   ;;  %700 = vmatpush.bf16.msra.mxu0 %v1214_v6  ;;  %v1229_v12 = vld [vmem:[%s1612_s1 + $0xb0] sm:$0xff]  ;;  %v1228_v16 = vld [vmem:[%s1612_s1 + $0xa8] sm:$0xff]  ;;  %v1235_v17 = vld [vmem:[%s1612_s1 + $0xe0] sm:$0xff] }
   0x5   :  { %728 = vmatpush.bf16.msra.mxu2 %v1230_v8  ;;  %v1234_v20 = vld [vmem:[%s1612_s1 + $0xd8] sm:$0xff]  ;;  %v1211_v21 = vld [vmem:[%s1612_s1 + $0x20] sm:$0xff]  ;;  %v1233_v23 = vld [vmem:[%s1612_s1 + $0xd0] sm:$0xff] }
   0x6   :  { %v1227_v22 = vld [vmem:[%s1612_s1 + $0xa0] sm:$0xff]  ;;  %v1210_v24 = vld [vmem:[%s1612_s1 + $0x18] sm:$0xff]  ;;  %v1232_v27 = vld [vmem:[%s1612_s1 + $0xc8] sm:$0xff] }
   0x7   :  { %743 = vmatpush.bf16.msra.mxu3 %v1237_v10  ;;  %v1226_v25 = vld [vmem:[%s1612_s1 + $0x98] sm:$0xff]  ;;  %v1209_v28 = vld [vmem:[%s1612_s1 + $0x10] sm:$0xff]  ;;  %v1231_v31 = vld [vmem:[%s1612_s1 + $0xc0] sm:$0xff] }
   0x8   :  { %701 = vmatpush.bf16.msra.mxu0 %v1213_v11  ;;  %v1222_v26 = vld [vmem:[%s1612_s1 + $0x78] sm:$0xff]  ;;  %v1225_v29 = vld [vmem:[%s1612_s1 + $0x90] sm:$0xff]  ;;  %v1208_v32 = vld [vmem:[%s1612_s1 + $0x8] sm:$0xff] }
   0x9   :  { %729 = vmatpush.bf16.msra.mxu2 %v1229_v12  ;;  %714 = vmatpush.bf16.msra.mxu1 %v1222_v26  ;;  %v1221_v30 = vld [vmem:[%s1612_s1 + $0x70] sm:$0xff]  ;;  %v1224_v33 = vld [vmem:[%s1612_s1 + $0x88] sm:$0xff]  ;;  %v1207_v35 = vld [vmem:[%s1612_s1] sm:$0xff] }
   0xa   :  { %28 = vperm.xlu1 %1289, %v21_v4   ;;  %56 = vperm.xlu0 %1288, %v21_v4   ;;  %v1220_v34 = vld [vmem:[%s1612_s1 + $0x68] sm:$0xff]  ;;  %v1223_v36 = vld [vmem:[%s1612_s1 + $0x80] sm:$0xff]  ;;  %v1246_v37 = vld [vmem:[%s1612_s1 + $0x138] sm:$0xff] }
   0xb   :  { %744 = vmatpush.bf16.msra.mxu3 %v1236_v13  ;;  %v1262_v38 = vld [vmem:[%s1612_s1 + $0x1b8] sm:$0xff]  ;;  %v1219_v40 = vld [vmem:[%s1612_s1 + $0x60] sm:$0xff]  ;;  %v1245_v41 = vld [vmem:[%s1612_s1 + $0x130] sm:$0xff] }
   0xc   :  { %70 = vperm.xlu2 %1290, %v21_v4   ;;  %702 = vmatpush.bf16.msra.mxu0 %v1212_v14  ;;  %v1261_v42 = vld [vmem:[%s1612_s1 + $0x1b0] sm:$0xff]  ;;  %v1218_v44 = vld [vmem:[%s1612_s1 + $0x58] sm:$0xff]  ;;  %v1244_v46 = vld [vmem:[%s1612_s1 + $0x128] sm:$0xff] }
   0xd   :  { %730 = vmatpush.bf16.msra.mxu2 %v1228_v16  ;;  %715 = vmatpush.bf16.msra.mxu1 %v1221_v30  ;;  %v1260_v47 = vld [vmem:[%s1612_s1 + $0x1a8] sm:$0xff]  ;;  %v1217_v48 = vld [vmem:[%s1612_s1 + $0x50] sm:$0xff]  ;;  %v1270_v49 = vld [vmem:[%s1612_s1 + $0x1f8] sm:$0xff] }
   0xe   :  { %v1243_v50 = vld [vmem:[%s1612_s1 + $0x120] sm:$0xff]  ;;  %v1216_v52 = vld [vmem:[%s1612_s1 + $0x48] sm:$0xff]  ;;  %v1269_v55 = vld [vmem:[%s1612_s1 + $0x1f0] sm:$0xff] }
   0xf   :  { %745 = vmatpush.bf16.msra.mxu3 %v1235_v17  ;;  %v1259_v51 = vld [vmem:[%s1612_s1 + $0x1a0] sm:$0xff]  ;;  %v1242_v58 = vld [vmem:[%s1612_s1 + $0x118] sm:$0xff]  ;;  %v1268_v61 = vld [vmem:[%s1612_s1 + $0x1e8] sm:$0xff] }
  0x10   :  { %703 = vmatpush.bf16.msra.mxu0 %v1211_v21  ;;  %v1258_v59 = vld [vmem:[%s1612_s1 + $0x198] sm:$0xff]  ;;  %v1215_v60 = vld [vmem:[%s1612_s1 + $0x40] sm:$0xff]  ;;  %v1257_v3 = vld [vmem:[%s1612_s1 + $0x190] sm:$0xff] }
  0x11   :  { %731 = vmatpush.bf16.msra.mxu2 %v1227_v22  ;;  %716 = vmatpush.bf16.msra.mxu1 %v1220_v34  ;;  %v1254_v63 = vld [vmem:[%s1612_s1 + $0x178] sm:$0xff]  ;;  %v1253_v6 = vld [vmem:[%s1612_s1 + $0x170] sm:$0xff]  ;;  %v1240_v8 = vld [vmem:[%s1612_s1 + $0x108] sm:$0xff] }
  0x12   :  { %1292 = vset.pattern.permute.xlu1 %v1307_v7  ;;  %1291 = vset.pattern.permute.xlu0 %v1307_v7  ;;  %v1266_v10 = vld [vmem:[%s1612_s1 + $0x1d8] sm:$0xff]  ;;  %v1252_v11 = vld [vmem:[%s1612_s1 + $0x168] sm:$0xff]  ;;  %v1239_v12 = vld [vmem:[%s1612_s1 + $0x100] sm:$0xff] }
  0x13   :  { %42 = vperm.xlu1 %1292, %v21_v4   ;;  %39 = vperm.xlu0 %1291, %v20_v2   ;;  %v1255_v13 = vld [vmem:[%s1612_s1 + $0x180] sm:$0xff]  ;;  %v1265_v14 = vld [vmem:[%s1612_s1 + $0x1d0] sm:$0xff]  ;;  %v1250_v21 = vld [vmem:[%s1612_s1 + $0x158] sm:$0xff] }
  0x14   :  { %1293 = vset.pattern.permute.xlu2 %v1308_v9  ;;  %746 = vmatpush.bf16.msra.mxu3 %v1234_v20  ;;  %v1248_v34 = vld [vmem:[%s1612_s1 + $0x148] sm:$0xff] }
  0x15   :  { %109 = vperm.xlu2 %1293, %v20_v2   ;;  %704 = vmatpush.bf16.msra.mxu0 %v1210_v24  ;;  %v1263_v24 = vld [vmem:[%s1612_s1 + $0x1c0] sm:$0xff] }
  0x16   :  { %732 = vmatpush.bf16.msra.mxu2 %v1226_v25  ;;  %717 = vmatpush.bf16.msra.mxu1 %v1219_v40 }
  0x18   :  { %747 = vmatpush.bf16.msra.mxu3 %v1233_v23 }
  0x19   :  { %705 = vmatpush.bf16.msra.mxu0 %v1209_v28 }
  0x1a   :  { %733 = vmatpush.bf16.msra.mxu2 %v1225_v29  ;;  %718 = vmatpush.bf16.msra.mxu1 %v1218_v44 }
  0x1b   :  { %1294 = vset.pattern.permute.xlu1 %v1308_v9  ;;  %1296 = vset.pattern.permute.xlu0 %v1309_v15  ;;  %v1256_v9 = vld [vmem:[%s1612_s1 + $0x188] sm:$0xff] }
  0x1c   :  { %112 = vperm.xlu1 %1294, %v21_v4   ;;  %84 = vperm.xlu0 %1296, %v21_v4  }
  0x1d   :  { %1295 = vset.pattern.permute.xlu2 %v1309_v15  ;;  %748 = vmatpush.bf16.msra.mxu3 %v1232_v27  ;;  %v1251_v15 = vld [vmem:[%s1612_s1 + $0x160] sm:$0xff]  ;;  %v1249_v27 = vld [vmem:[%s1612_s1 + $0x150] sm:$0xff] }
  0x1e   :  { %81 = vperm.xlu2 %1295, %v20_v2   ;;  %706 = vmatpush.bf16.msra.mxu0 %v1208_v32 }
  0x1f   :  { %734 = vmatpush.bf16.msra.mxu2 %v1224_v33  ;;  %719 = vmatpush.bf16.msra.mxu1 %v1217_v48 }
  0x21   :  { %749 = vmatpush.bf16.msra.mxu3 %v1231_v31 }
  0x22   :  { %707 = vmatpush.bf16.msra.mxu0 %v1207_v35 }
  0x23   :  { %735 = vmatpush.bf16.msra.mxu2 %v1223_v36  ;;  %720 = vmatpush.bf16.msra.mxu1 %v1216_v52 }
  0x24   :  { %1297 = vset.pattern.permute.xlu1 %v1310_v18  ;;  %1301 = vset.pattern.permute.xlu0 %v1310_v18 }
  0x25   :  { %123 = vperm.xlu1 %1297, %v20_v2   ;;  %798 = vmatpush.bf16.msrb.mxu3 %v1270_v49 }
  0x26   :  { %1298 = vset.pattern.permute.xlu2 %v1310_v18  ;;  %756 = vmatpush.bf16.msrb.mxu0 %v1246_v37  ;;  %v1264_v18 = vld [vmem:[%s1612_s1 + $0x1c8] sm:$0xff] }
  0x27   :  { %126 = vperm.xlu2 %1298, %v21_v4   ;;  %784 = vmatpush.bf16.msrb.mxu2 %v1262_v38 }
  0x28   :  { %721 = vmatpush.bf16.msra.mxu1 %v1215_v60 }
  0x29   :  { %799 = vmatpush.bf16.msrb.mxu3 %v1269_v55 }
  0x2a   :  { %757 = vmatpush.bf16.msrb.mxu0 %v1245_v41  ;;  %v1247_v41 = vld [vmem:[%s1612_s1 + $0x140] sm:$0xff] }
  0x2b   :  { %785 = vmatpush.bf16.msrb.mxu2 %v1261_v42 }
  0x2c   :  { %770 = vmatpush.bf16.msrb.mxu1 %v1254_v63 }
  0x2d   :  { %1299 = vset.pattern.permute.xlu1 %v1311_v19  ;;  %800 = vmatpush.bf16.msrb.mxu3 %v1268_v61 }
  0x2e   :  { %95 = vperm.xlu1 %1299, %v20_v2   ;;  %758 = vmatpush.bf16.msrb.mxu0 %v1244_v46  ;;  %v1241_v2 = vld [vmem:[%s1612_s1 + $0x110] sm:$0xff] }
  0x2f   :  { %1300 = vset.pattern.permute.xlu2 %v1311_v19  ;;  %786 = vmatpush.bf16.msrb.mxu2 %v1260_v47 }
  0x30   :  { %98 = vperm.xlu2 %1300, %v21_v4   ;;  %v1267_v4 = vld [vmem:[%s1612_s1 + $0x1e0] sm:$0xff]  ;;  %771 = vmatpush.bf16.msrb.mxu1 %v1253_v6 }
  0x31   :  { %801 = vmatpush.bf16.msrb.mxu3 %v1267_v4 }
  0x32   :  { %759 = vmatpush.bf16.msrb.mxu0 %v1243_v50 }
  0x33   :  { %787 = vmatpush.bf16.msrb.mxu2 %v1259_v51 }
  0x34   :  { %772 = vmatpush.bf16.msrb.mxu1 %v1252_v11 }
  0x35   :  { %802 = vmatpush.bf16.msrb.mxu3 %v1266_v10 }
  0x36   :  { %760 = vmatpush.bf16.msrb.mxu0 %v1242_v58 }
  0x37   :  { %788 = vmatpush.bf16.msrb.mxu2 %v1258_v59 }
  0x38   :  { %773 = vmatpush.bf16.msrb.mxu1 %v1251_v15 }
  0x39   :  { %803 = vmatpush.bf16.msrb.mxu3 %v1265_v14 }
  0x3a   :  { %761 = vmatpush.bf16.msrb.mxu0 %v1241_v2 }
  0x3b   :  { %789 = vmatpush.bf16.msrb.mxu2 %v1257_v3 }
  0x3c   :  { %774 = vmatpush.bf16.msrb.mxu1 %v1250_v21 }
  0x3d   :  { %804 = vmatpush.bf16.msrb.mxu3 %v1264_v18 }
  0x3e   :  { %762 = vmatpush.bf16.msrb.mxu0 %v1240_v8 }
  0x3f   :  { %790 = vmatpush.bf16.msrb.mxu2 %v1256_v9 }
  0x40   :  { %775 = vmatpush.bf16.msrb.mxu1 %v1249_v27 }
  0x41   :  { %805 = vmatpush.bf16.msrb.mxu3 %v1263_v24  ;;  %v1277_v24 = vld [vmem:[%s1615_s3 + $0x30] sm:$0xff] }
  0x42   :  { %763 = vmatpush.bf16.msrb.mxu0 %v1239_v12 }
  0x43   :  { %791 = vmatpush.bf16.msrb.mxu2 %v1255_v13 }
  0x44   :  { %776 = vmatpush.bf16.msrb.mxu1 %v1248_v34 }
  0x48   :  { %777 = vmatpush.bf16.msrb.mxu1 %v1247_v41 }
  0x5e   :  { %v68_v45 = vpop.permute.xlu2 %67 }
  0x5f   :  { %vm72_vm0 = vcmp.eq.s32.totalorder %v68_v45, %v1445_v43 }
  0x60   :  { %v909_v54 = vsel %vm72_vm0, 1.0, %v1312_v53 }
  0x61   :  { %v78_v56 = vpack.c.bf16 %v909_v54, %v909_v54 }
  0x63   :  { %v156_v0 = vunpack.c.l.b16 %v78_v56 }
  0x66   :  { %v71_v57 = vpop.permute.xlu2 %70 }
  0x67   :  { %vm73_vm1 = vcmp.eq.s32.totalorder %v71_v57, %v1445_v43 }
  0x68   :  { %v910_v62 = vsel %vm73_vm1, 1.0, %v1312_v53 }
  0x69   :  { %v79_v1 = vpack.c.bf16 %v910_v62, %v910_v62 }
  0x6b   :  { %v157_v5 = vunpack.c.l.b16 %v79_v1 }
  0x6d   :  { %v158_v7 = vpack.c.b16 %v157_v5, %v156_v0 }
  0x6f   :  { %750 = vmatmul.bf16.vlgmr.msra.gmra.mxu3 %v158_v7  ;;  %v110_v20 = vpop.permute.xlu2 %109 }
  0x70   :  { %vm114_vm9 = vcmp.eq.s32.totalorder %v110_v20, %v1445_v43 }
  0x71   :  { %v915_v52 = vsel %vm114_vm9, 1.0, %v1312_v53 }
  0x72   :  { %v120_v59 = vpack.c.bf16 %v915_v52, %v915_v52 }
  0x74   :  { %v26_v16 = vpop.permute.xlu1 %25  ;;  %v54_v17 = vpop.permute.xlu0 %53  ;;  %v174_v1 = vunpack.c.l.b16 %v120_v59 }
  0x75   :  { %vm58_vm2 = vcmp.eq.s32.totalorder %v54_v17, %v1445_v43  ;;  %vm30_vm3 = vcmp.eq.s32.totalorder %v26_v16, %v1445_v43 }
  0x76   :  { %v907_v19 = vsel %vm58_vm2, 1.0, %v1312_v53  ;;  %v903_v22 = vsel %vm30_vm3, 1.0, %v1312_v53 }
  0x77   :  { %v64_v23 = vpack.c.bf16 %v907_v19, %v907_v19  ;;  %v36_v28 = vpack.c.bf16 %v903_v22, %v903_v22 }
  0x78   :  { %v82_v38 = vpop.permute.xlu2 %81 }
  0x79   :  { %v150_v31 = vunpack.c.l.b16 %v64_v23  ;;  %v138_v35 = vunpack.c.l.b16 %v36_v28  ;;  %vm86_vm8 = vcmp.eq.s32.totalorder %v82_v38, %v1445_v43  ;;  %v1278_v23 = vld [vmem:[%s1615_s3 + $0x38] sm:$0xff]  ;;  %v1272_v28 = vld [vmem:[%s1615_s3 + $0x8] sm:$0xff] }
  0x7a   :  { %v911_v51 = vsel %vm86_vm8, 1.0, %v1312_v53 }
  0x7b   :  { %v92_v56 = vpack.c.bf16 %v911_v51, %v911_v51 }
  0x7c   :  { %v29_v25 = vpop.permute.xlu1 %28  ;;  %v57_v26 = vpop.permute.xlu0 %56 }
  0x7d   :  { %vm31_vm4 = vcmp.eq.s32.totalorder %v29_v25, %v1445_v43  ;;  %vm59_vm5 = vcmp.eq.s32.totalorder %v57_v26, %v1445_v43  ;;  %v162_v62 = vunpack.c.l.b16 %v92_v56  ;;  %v1274_v25 = vld [vmem:[%s1615_s3 + $0x18] sm:$0xff]  ;;  %v1273_v26 = vld [vmem:[%s1615_s3 + $0x10] sm:$0xff] }
  0x7e   :  { %v904_v29 = vsel %vm31_vm4, 1.0, %v1312_v53  ;;  %v908_v30 = vsel %vm59_vm5, 1.0, %v1312_v53 }
  0x7f   :  { %v37_v32 = vpack.c.bf16 %v904_v29, %v904_v29  ;;  %v65_v33 = vpack.c.bf16 %v908_v30, %v908_v30 }
  0x81   :  { %v139_v36 = vunpack.c.l.b16 %v37_v32  ;;  %v151_v37 = vunpack.c.l.b16 %v65_v33  ;;  %v127_v55 = vpop.permute.xlu2 %126  ;;  %v1302_v33 = vld [vmem:[%s1613_s2] ss:$0 sm:$0xff] }
  0x82   :  { %vm129_vm12 = vcmp.eq.s32.totalorder %v127_v55, %v1445_v43 }
  0x83   :  { %v140_v39 = vpack.c.b16 %v139_v36, %v138_v35  ;;  %v152_v40 = vpack.c.b16 %v151_v37, %v150_v31  ;;  %v918_v4 = vsel %vm129_vm12, 1.0, %v1312_v53  ;;  %v1271_v31 = vld [vmem:[%s1615_s3] sm:$0xff] }
  0x84   :  { %v135_v7 = vpack.c.bf16 %v918_v4, %v918_v4 }
  0x85   :  { %708 = vmatmul.bf16.vlgmr.msra.gmra.mxu0 %v140_v39  ;;  %v43_v42 = vpop.permute.xlu1 %42  ;;  %736 = vmatmul.bf16.vlgmr.msra.gmra.mxu2 %v152_v40  ;;  %v40_v44 = vpop.permute.xlu0 %39 }
  0x86   :  { %vm45_vm6 = vcmp.eq.s32.totalorder %v43_v42, %v1445_v43  ;;  %vm44_vm7 = vcmp.eq.s32.totalorder %v40_v44, %v1445_v43  ;;  %v181_v11 = vunpack.c.l.b16 %v135_v7  ;;  %883 = vmatpush.bf16.msra.mxu0 %v1278_v23 }
  0x87   :  { %v906_v45 = vsel %vm45_vm6, 1.0, %v1312_v53  ;;  %v905_v46 = vsel %vm44_vm7, 1.0, %v1312_v53 }
  0x88   :  { %v51_v47 = vpack.c.bf16 %v906_v45, %v906_v45  ;;  %v50_v48 = vpack.c.bf16 %v905_v46, %v905_v46 }
  0x8a   :  { %v145_v49 = vunpack.c.l.b16 %v51_v47  ;;  %v144_v50 = vunpack.c.l.b16 %v50_v48  ;;  %v99_v8 = vpop.permute.xlu2 %98  ;;  %884 = vmatpush.bf16.msra.mxu0 %v1277_v24 }
  0x8b   :  { %vm101_vm14 = vcmp.eq.s32.totalorder %v99_v8, %v1445_v43 }
  0x8c   :  { %v146_v54 = vpack.c.b16 %v145_v49, %v144_v50  ;;  %v914_v14 = vsel %vm101_vm14, 1.0, %v1312_v53 }
  0x8d   :  { %v107_v16 = vpack.c.bf16 %v914_v14, %v914_v14 }
  0x8e   :  { %v113_v57 = vpop.permute.xlu1 %112  ;;  %722 = vmatmul.bf16.vlgmr.msra.gmra.mxu1 %v146_v54  ;;  %v85_v58 = vpop.permute.xlu0 %84 }
  0x8f   :  { %vm115_vm10 = vcmp.eq.s32.totalorder %v113_v57, %v1445_v43  ;;  %vm87_vm11 = vcmp.eq.s32.totalorder %v85_v58, %v1445_v43  ;;  %v169_v19 = vunpack.c.l.b16 %v107_v16 }
  0x90   :  { %v916_v60 = vsel %vm115_vm10, 1.0, %v1312_v53  ;;  %v912_v61 = vsel %vm87_vm11, 1.0, %v1312_v53 }
  0x91   :  { %v121_v63 = vpack.c.bf16 %v916_v60, %v916_v60  ;;  %v93_v0 = vpack.c.bf16 %v912_v61, %v912_v61 }
  0x93   :  { %v175_v2 = vunpack.c.l.b16 %v121_v63  ;;  %v163_v3 = vunpack.c.l.b16 %v93_v0 }
  0x95   :  { %v164_v5 = vpack.c.b16 %v163_v3, %v162_v62  ;;  %v176_v6 = vpack.c.b16 %v175_v2, %v174_v1  ;;  %v1303_v3 = vld [vmem:[%s1614_s4] ss:$0 sm:$0xff] }
  0x97   :  { %v124_v9 = vpop.permute.xlu1 %123  ;;  %764 = vmatmul.bf16.vlgmr.msrb.gmra.mxu0 %v164_v5  ;;  %792 = vmatmul.bf16.vlgmr.msrb.gmra.mxu2 %v176_v6 }
  0x98   :  { %vm128_vm13 = vcmp.eq.s32.totalorder %v124_v9, %v1445_v43 }
  0x99   :  { %v917_v10 = vsel %vm128_vm13, 1.0, %v1312_v53 }
  0x9a   :  { %v134_v12 = vpack.c.bf16 %v917_v10, %v917_v10 }
  0x9c   :  { %v180_v13 = vunpack.c.l.b16 %v134_v12 }
  0x9e   :  { %v182_v15 = vpack.c.b16 %v181_v11, %v180_v13 }
  0xa0   :  { %806 = vmatmul.bf16.vlgmr.msrb.gmra.mxu3 %v182_v15  ;;  %v96_v17 = vpop.permute.xlu1 %95 }
  0xa1   :  { %vm100_vm15 = vcmp.eq.s32.totalorder %v96_v17, %v1445_v43  ;;  %v1276_v43 = vld [vmem:[%s1615_s3 + $0x28] sm:$0xff] }
  0xa2   :  { %v913_v18 = vsel %vm100_vm15, 1.0, %v1312_v53  ;;  %885 = vmatpush.bf16.msra.mxu0 %v1276_v43  ;;  %v1275_v53 = vld [vmem:[%s1615_s3 + $0x20] sm:$0xff] }
  0xa3   :  { %v106_v20 = vpack.c.bf16 %v913_v18, %v913_v18 }
  0xa5   :  { %v168_v21 = vunpack.c.l.b16 %v106_v20 }
  0xa6   :  { %886 = vmatpush.bf16.msra.mxu0 %v1275_v53 }
  0xa7   :  { %v170_v22 = vpack.c.b16 %v169_v19, %v168_v21 }
  0xa9   :  { %778 = vmatmul.bf16.vlgmr.msrb.gmra.mxu1 %v170_v22 }
  0xaa   :  { %887 = vmatpush.bf16.msra.mxu0 %v1274_v25 }
  0xae   :  { %888 = vmatpush.bf16.msra.mxu0 %v1273_v26 }
  0xb2   :  { %889 = vmatpush.bf16.msra.mxu0 %v1272_v28 }
  0xb6   :  { %890 = vmatpush.bf16.msra.mxu0 %v1271_v31 }
  0xf2   :  { %v751_v32 = vpop.f32.mrf.mxu3 }
  0xfa   :  { %v753_v39 = vpop.f32.mrf.mxu3 }
 0x102   :  { %v709_v27 = vpop.f32.mrf.mxu0 }
 0x103   :  { %v710_v35 = vadd.f32 %v1302_v33, %v709_v27 }
 0x108   :  { %v737_v29 = vpop.f32.mrf.mxu2 }
 0x10a   :  { %v711_v34 = vpop.f32.mrf.mxu0 }
 0x10b   :  { %v723_v30 = vpop.f32.mrf.mxu1  ;;  %v712_v41 = vadd.f32 %v1302_v33, %v711_v34 }
 0x10c   :  { %v724_v36 = vadd.f32 %v723_v30, %v710_v35 }
 0x10e   :  { %v738_v42 = vadd.f32 %v737_v29, %v724_v36 }
 0x110   :  { %v739_v37 = vpop.f32.mrf.mxu2  ;;  %v752_v45 = vadd.f32 %v751_v32, %v738_v42 }
 0x113   :  { %v725_v38 = vpop.f32.mrf.mxu1 }
 0x114   :  { %v765_v40 = vpop.f32.mrf.mxu0  ;;  %v726_v44 = vadd.f32 %v725_v38, %v712_v41 }
 0x115   :  { %v766_v49 = vadd.f32 %v765_v40, %v752_v45 }
 0x116   :  { %v740_v48 = vadd.f32 %v739_v37, %v726_v44 }
 0x118   :  { %v754_v54 = vadd.f32 %v753_v39, %v740_v48 }
 0x11a   :  { %v793_v46 = vpop.f32.mrf.mxu2 }
 0x11c   :  { %v767_v52 = vpop.f32.mrf.mxu0 }
 0x11d   :  { %v768_v55 = vadd.f32 %v767_v52, %v754_v54 }
 0x122   :  { %v795_v59 = vpop.f32.mrf.mxu2 }
 0x123   :  { %v807_v50 = vpop.f32.mrf.mxu3 }
 0x126   :  { %v779_v47 = vpop.f32.mrf.mxu1 }
 0x127   :  { %v780_v51 = vadd.f32 %v779_v47, %v766_v49 }
 0x129   :  { %v794_v56 = vadd.f32 %v793_v46, %v780_v51 }
 0x12b   :  { %v808_v60 = vadd.f32 %v807_v50, %v794_v56  ;;  %v809_v62 = vpop.f32.mrf.mxu3 }
 0x12d   :  { %v812_v0 = vmax.f32 %v808_v60, 0.0 }
 0x12e   :  { %v781_v57 = vpop.f32.mrf.mxu1 }
 0x12f   :  { %v782_v58 = vadd.f32 %v781_v57, %v768_v55 }
 0x131   :  { %v796_v61 = vadd.f32 %v795_v59, %v782_v58 }
 0x133   :  { %v810_v63 = vadd.f32 %v809_v62, %v796_v61 }
 0x135   :  { %v813_v1 = vmax.f32 %v810_v63, 0.0 }
 0x137   :  { %v814_v2 = vpack.c.bf16 %v813_v1, %v812_v0 }
 0x139   :  { %891 = vmatmul.bf16.vlgmr.msra.gmra.mxu0 %v814_v2 }
 0x1b6   :  { %v892_v4 = vpop.f32.mrf.mxu0 }
 0x1b7   :  { %v893_v5 = vadd.f32 %v1303_v3, %v892_v4 }
 0x1b9   :  { %897 = vst [vmem:[%s1616_s5] sm:$0xff] %v893_v5 }
 0x1be   :  { %v894_v6 = vpop.f32.mrf.mxu0 }
 0x1bf   :  { %v895_v7 = vadd.f32 %v1303_v3, %v894_v6 }
 0x1c1   :  { %898 = vst [vmem:[%s1616_s5 + $0x8] sm:$0xff] %v895_v7 }

</bundles_post_ra>
